<compile_context>
chip_gen: v5e
topology: v5e:2x2
jax: 0.10.0
libtpu: 0.0.40
codegen_flags: <defaults>
</compile_context>

<pallas_src>
import functools
import numpy as np
import jax
import jax.numpy as jnp
from jax.experimental import pallas as pl
from jax.experimental.pallas import tpu as pltpu

NEG_SLOPE = 0.01  # nn.LeakyReLU() default negative_slope


# ----------------------------------------------------------------------------
# Bicubic-antialias interpolation matrices (matches ATen's _compute_weights_aa,
# a = -0.5 cubic filter, PIL-style).  Cached on (in_dim, out_dim).
# ----------------------------------------------------------------------------
def _cubic(x, a=-0.5):
    x = abs(float(x))
    if x < 1.0:
        return ((a + 2.0) * x - (a + 3.0)) * x * x + 1.0
    if x < 2.0:
        return (((x - 5.0) * x + 8.0) * x - 4.0) * a
    return 0.0


@functools.lru_cache(maxsize=None)
def _bicubic_aa_matrix_np(in_dim, out_dim):
    scale = in_dim / out_dim
    support = 2.0 * scale if scale >= 1.0 else 2.0
    invscale = (1.0 / scale) if scale >= 1.0 else 1.0
    W = np.zeros((out_dim, in_dim), dtype=np.float64)
    for i in range(out_dim):
        center = scale * (i + 0.5)
        xmin = max(int(center - support + 0.5), 0)
        xmax = min(int(center + support + 0.5), in_dim)
        w = np.array([_cubic((j - center + 0.5) * invscale)
                      for j in range(xmin, xmax)], dtype=np.float64)
        W[i, xmin:xmax] = w / w.sum()
    return W.astype(np.float32)


def bicubic_aa_matrix(in_dim, out_dim):
    """(out_dim, in_dim) so that y = W @ x reproduces bicubic+antialias resize."""
    return jnp.asarray(_bicubic_aa_matrix_np(in_dim, out_dim))


@functools.lru_cache(maxsize=None)
def _transform_mats_np(in_size, out_size, B, OUT_P):
    """U, I_B (x) U^T, row-padded D, I_B (x) D_pad^T (all float32 numpy)."""
    IN, UP = in_size, 2 * in_size
    U = _bicubic_aa_matrix_np(IN, UP)                       # (UP, IN)
    D = _bicubic_aa_matrix_np(UP, out_size)                 # (out, UP)
    D_p = np.zeros((OUT_P, UP), np.float32)
    D_p[:out_size] = D                                      # (OUT_P, UP)
    eye = np.eye(B, dtype=np.float32)
    UbT = np.kron(eye, U.T.astype(np.float32))              # (B*IN, B*UP)
    DbT = np.kron(eye, D_p.T)                               # (B*UP, B*OUT_P)
    return U, UbT, D_p, DbT


# ----------------------------------------------------------------------------
# Kernel: one slab of B images per grid step; four plain 2-D MXU dots, no
# in-kernel reshapes / relayouts.
#   x slab   : (IN, B*IN)          x[h, b*IN + w]      = X_b[h, w]
#   stage 1  : (UP, B*IN)          U @ x               (upsample H)
#   stage 2  : (UP, B*UP)          t @ (I_B (x) U^T)   (upsample W, per image)
#   LeakyReLU
#   stage 3  : (UP, B*OUT_P)       t @ (I_B (x) D^T)   (downsample W, per image)
#   stage 4  : (OUT_P, B*OUT_P)    D @ t               (downsample H, dense store)
# ----------------------------------------------------------------------------
def cno_lrelu_kernel(u_ref, ubt_ref, d_ref, dbt_ref, x_ref, o_ref):
    x = x_ref[0]                                                      # (IN, B*IN)
    t = jnp.dot(u_ref[...], x, preferred_element_type=jnp.float32)    # (UP, B*IN)
    t = jnp.dot(t, ubt_ref[...], preferred_element_type=jnp.float32)  # (UP, B*UP)
    t = jnp.where(t >= 0, t, NEG_SLOPE * t)                           # LeakyReLU
    t = jnp.dot(t, dbt_ref[...], preferred_element_type=jnp.float32)  # (UP, B*OUT_P)
    y = jnp.dot(d_ref[...], t, preferred_element_type=jnp.float32)    # (OUT_P, B*OUT_P)
    o_ref[0] = y.astype(o_ref.dtype)


# ----------------------------------------------------------------------------
# Wrapper
# ----------------------------------------------------------------------------
def _round_up(a, m):
    return (a + m - 1) // m * m


def _pick_batch(nc, up):
    """Images per grid step: power of two, as large as possible while keeping
    >= 2 grid steps (both v7x TensorCores busy), capped at 16 and so that the
    block-diagonal transforms stay KB-scale (B*UP <= 1024)."""
    if nc < 2:
        return 1
    cap = min(16, max(1, nc // 2), max(1, 1024 // up))
    b = 1
    while b * 2 <= cap:
        b *= 2
    return b


def cno_lrelu(x, in_size, out_size):
    """x: (N, C, in_size, in_size) float32 -> (N, C, out_size, out_size)."""
    N, C, H, W = x.shape
    assert H == in_size and W == in_size
    IN, UP = in_size, 2 * in_size
    NC = N * C

    B = _pick_batch(NC, UP)
    G = pl.cdiv(NC, B)
    NC_pad = G * B

    # Pad D's output rows: multiple of 8 sublanes AND (if cheap) enough that the
    # output block's last dim (B * OUT_P) is a multiple of 128 -> unmasked vst.
    OUT_P = _round_up(out_size, 8)
    while (B * OUT_P) % 128 != 0 and B * OUT_P < 512:
        OUT_P += 8

    U_np, UbT_np, Dp_np, DbT_np = _transform_mats_np(in_size, out_size, B, OUT_P)
    U = jnp.asarray(U_np)          # (UP, IN)
    UbT = jnp.asarray(UbT_np)      # (B*IN, B*UP)
    D_p = jnp.asarray(Dp_np)       # (OUT_P, UP)
    DbT = jnp.asarray(DbT_np)      # (B*UP, B*OUT_P)

    # (N, C, H, W) -> (G, IN, B*IN): B images side by side along the lane axis.
    xb = x.reshape(NC, IN, IN).astype(jnp.float32)
    if NC_pad != NC:
        xb = jnp.pad(xb, ((0, NC_pad - NC), (0, 0), (0, 0)))
    x_slab = xb.reshape(G, B, IN, IN).transpose(0, 2, 1, 3).reshape(G, IN, B * IN)

    flops = 2 * G * (UP * IN * (B * IN)
                     + UP * (B * IN) * (B * UP)
                     + UP * (B * UP) * (B * OUT_P)
                     + OUT_P * UP * (B * OUT_P))
    bytes_accessed = 4 * (NC_pad * IN * IN + G * OUT_P * B * OUT_P
                          + G * (UP * IN + (B * IN) * (B * UP)
                                 + OUT_P * UP + (B * UP) * (B * OUT_P)))

    out = pl.pallas_call(
        cno_lrelu_kernel,
        out_shape=jax.ShapeDtypeStruct((G, OUT_P, B * OUT_P), jnp.float32),
        grid_spec=pltpu.PrefetchScalarGridSpec(
            num_scalar_prefetch=0,
            grid=(G,),
            in_specs=[
                pl.BlockSpec((UP, IN), lambda g: (0, 0)),               # U
                pl.BlockSpec((B * IN, B * UP), lambda g: (0, 0)),       # I_B (x) U^T
                pl.BlockSpec((OUT_P, UP), lambda g: (0, 0)),            # D (row-padded)
                pl.BlockSpec((B * UP, B * OUT_P), lambda g: (0, 0)),    # I_B (x) D^T
                pl.BlockSpec((1, IN, B * IN), lambda g: (g, 0, 0)),     # X slab
            ],
            out_specs=pl.BlockSpec((1, OUT_P, B * OUT_P), lambda g: (g, 0, 0)),
        ),
        compiler_params=pltpu.CompilerParams(dimension_semantics=("parallel",)),
        cost_estimate=pl.CostEstimate(flops=flops, transcendentals=0,
                                      bytes_accessed=bytes_accessed),
    )(U, UbT, D_p, DbT, x_slab)

    # Undo the slab layout and strip padding (batch + spatial).
    out = (out.reshape(G, OUT_P, B, OUT_P)
              .transpose(0, 2, 1, 3)
              .reshape(NC_pad, OUT_P, OUT_P)[:NC, :out_size, :out_size])
    return out.reshape(N, C, out_size, out_size).astype(x.dtype)


# ----------------------------------------------------------------------------
if __name__ == "__main__":
    in_size, out_size = 16, 12
    key = jax.random.PRNGKey(0)
    x = jax.random.normal(key, (2, 4, in_size, in_size), dtype=jnp.float32)

    y = cno_lrelu(x, in_size, out_size)
    y = jax.block_until_ready(y)

    # Pure-JAX reference of the same separable formulation.
    U = bicubic_aa_matrix(in_size, 2 * in_size)
    D = bicubic_aa_matrix(2 * in_size, out_size)
    up = jnp.einsum('oi,ncij,pj->ncop', U, x, U)
    act = jnp.where(up >= 0, up, NEG_SLOPE * up)
    ref = jnp.einsum('oi,ncij,pj->ncop', D, act, D)
    np.testing.assert_allclose(np.asarray(y), np.asarray(ref), rtol=1e-4, atol=1e-4)

    assert y.shape == (2, 4, out_size, out_size)
    print("KERNEL_OK")
</pallas_src>

<mosaic_0001>
module attributes {stable_mosaic.version = 11 : i64} {
  func.func @cno_lrelu_kernel(%arg0: i32, %arg1: memref<32x16xf32, #tpu.memory_space<vmem>>, %arg2: memref<64x128xf32, #tpu.memory_space<vmem>>, %arg3: memref<32x32xf32, #tpu.memory_space<vmem>>, %arg4: memref<128x128xf32, #tpu.memory_space<vmem>>, %arg5: memref<1x16x64xf32, #tpu.memory_space<vmem>>, %arg6: memref<1x32x128xf32, #tpu.memory_space<vmem>>) attributes {dimension_semantics = [#tpu.dimension_semantics<parallel>], iteration_bounds = array<i64: 2>, scalar_prefetch = 0 : i64, scratch_operands = 0 : i64, tpu.core_type = #tpu.core_type<tc>, window_params = [{pipeline_mode = #tpu.pipeline_mode<synchronous>, transform_indices = @transform_0, window_bounds = array<i64: 32, 16>}, {pipeline_mode = #tpu.pipeline_mode<synchronous>, transform_indices = @transform_1, window_bounds = array<i64: 64, 128>}, {pipeline_mode = #tpu.pipeline_mode<synchronous>, transform_indices = @transform_2, window_bounds = array<i64: 32, 32>}, {pipeline_mode = #tpu.pipeline_mode<synchronous>, transform_indices = @transform_3, window_bounds = array<i64: 128, 128>}, {transform_indices = @transform_4, window_bounds = array<i64: 1, 16, 64>}, {transform_indices = @transform_5, window_bounds = array<i64: 1, 32, 128>}]} {
    %c0 = arith.constant 0 : index
    %c0_0 = arith.constant 0 : index
    %c0_1 = arith.constant 0 : index
    %0 = vector.load %arg5[%c0, %c0_0, %c0_1] : memref<1x16x64xf32, #tpu.memory_space<vmem>>, vector<1x16x64xf32>
    %1 = vector.shape_cast %0 : vector<1x16x64xf32> to vector<16x64xf32>
    %c0_2 = arith.constant 0 : index
    %c0_3 = arith.constant 0 : index
    %2 = vector.load %arg1[%c0_2, %c0_3] : memref<32x16xf32, #tpu.memory_space<vmem>>, vector<32x16xf32>
    %cst = arith.constant dense<0.000000e+00> : vector<32x64xf32>
    %3 = tpu.matmul %2, %1, %cst {dimension_numbers = #tpu.dot_dimension_numbers<[1], [0], [0], [1], [0, 0, 1, 1], [], []>} : vector<32x16xf32>, vector<16x64xf32>, vector<32x64xf32> -> vector<32x64xf32>
    %c0_4 = arith.constant 0 : index
    %c0_5 = arith.constant 0 : index
    %4 = vector.load %arg2[%c0_4, %c0_5] : memref<64x128xf32, #tpu.memory_space<vmem>>, vector<64x128xf32>
    %cst_6 = arith.constant dense<0.000000e+00> : vector<32x128xf32>
    %5 = tpu.matmul %3, %4, %cst_6 {dimension_numbers = #tpu.dot_dimension_numbers<[1], [0], [0], [1], [0, 0, 1, 1], [], []>} : vector<32x64xf32>, vector<64x128xf32>, vector<32x128xf32> -> vector<32x128xf32>
    %cst_7 = arith.constant 0.000000e+00 : f32
    %6 = vector.broadcast %cst_7 : f32 to vector<32x128xf32>
    %7 = arith.cmpf oge, %5, %6 : vector<32x128xf32>
    %cst_8 = arith.constant 0.00999999977 : f32
    %8 = vector.broadcast %cst_8 : f32 to vector<32x128xf32>
    %9 = arith.mulf %8, %5 : vector<32x128xf32>
    %10 = arith.select %7, %5, %9 : vector<32x128xi1>, vector<32x128xf32>
    %c0_9 = arith.constant 0 : index
    %c0_10 = arith.constant 0 : index
    %11 = vector.load %arg4[%c0_9, %c0_10] : memref<128x128xf32, #tpu.memory_space<vmem>>, vector<128x128xf32>
    %cst_11 = arith.constant dense<0.000000e+00> : vector<32x128xf32>
    %12 = tpu.matmul %10, %11, %cst_11 {dimension_numbers = #tpu.dot_dimension_numbers<[1], [0], [0], [1], [0, 0, 1, 1], [], []>} : vector<32x128xf32>, vector<128x128xf32>, vector<32x128xf32> -> vector<32x128xf32>
    %c0_12 = arith.constant 0 : index
    %c0_13 = arith.constant 0 : index
    %13 = vector.load %arg3[%c0_12, %c0_13] : memref<32x32xf32, #tpu.memory_space<vmem>>, vector<32x32xf32>
    %cst_14 = arith.constant dense<0.000000e+00> : vector<32x128xf32>
    %14 = tpu.matmul %13, %12, %cst_14 {dimension_numbers = #tpu.dot_dimension_numbers<[1], [0], [0], [1], [0, 0, 1, 1], [], []>} : vector<32x32xf32>, vector<32x128xf32>, vector<32x128xf32> -> vector<32x128xf32>
    %c0_15 = arith.constant 0 : index
    %c0_16 = arith.constant 0 : index
    %c0_17 = arith.constant 0 : index
    %15 = vector.load %arg6[%c0_15, %c0_16, %c0_17] : memref<1x32x128xf32, #tpu.memory_space<vmem>>, vector<1x32x128xf32>
    %16 = vector.shape_cast %15 : vector<1x32x128xf32> to vector<32x128xf32>
    %17 = vector.shape_cast %14 : vector<32x128xf32> to vector<1x32x128xf32>
    tpu.vector_store %arg6[%c0_15, %c0_16, %c0_17], %17 {strides = array<i32>} : memref<1x32x128xf32, #tpu.memory_space<vmem>>, vector<1x32x128xf32>,
    return
  }
  func.func @transform_0(%arg0: i32) -> (i32, i32) {
    %c0_i32 = arith.constant 0 : i32
    %c0_i32_0 = arith.constant 0 : i32
    %c0_i32_1 = arith.constant 0 : i32
    return %c0_i32, %c0_i32_0 : i32, i32
  }
  func.func @transform_1(%arg0: i32) -> (i32, i32) {
    %c0_i32 = arith.constant 0 : i32
    %c0_i32_0 = arith.constant 0 : i32
    %c0_i32_1 = arith.constant 0 : i32
    return %c0_i32, %c0_i32_0 : i32, i32
  }
  func.func @transform_2(%arg0: i32) -> (i32, i32) {
    %c0_i32 = arith.constant 0 : i32
    %c0_i32_0 = arith.constant 0 : i32
    %c0_i32_1 = arith.constant 0 : i32
    return %c0_i32, %c0_i32_0 : i32, i32
  }
  func.func @transform_3(%arg0: i32) -> (i32, i32) {
    %c0_i32 = arith.constant 0 : i32
    %c0_i32_0 = arith.constant 0 : i32
    %c0_i32_1 = arith.constant 0 : i32
    return %c0_i32, %c0_i32_0 : i32, i32
  }
  func.func @transform_4(%arg0: i32) -> (i32, i32, i32) {
    %c0_i32 = arith.constant 0 : i32
    %c0_i32_0 = arith.constant 0 : i32
    %c0_i32_1 = arith.constant 0 : i32
    return %arg0, %c0_i32, %c0_i32_0 : i32, i32, i32
  }
  func.func @transform_5(%arg0: i32) -> (i32, i32, i32) {
    %c0_i32 = arith.constant 0 : i32
    %c0_i32_0 = arith.constant 0 : i32
    %c0_i32_1 = arith.constant 0 : i32
    return %arg0, %c0_i32, %c0_i32_0 : i32, i32, i32
  }
}

</mosaic_0001>

<bundles_post_ra>
// kernel: tpu_custom_call.1
= control target key start
LH: loop header
LB: loop body
LE: loop exit
PB: predicated region body
PF: predicated region fallthrough
CT: control target
= control target key end

     0   :  { %10 = vsyncpa [#allocation3], 0  ;;  %s1098_s0 = inlined_call_operand.vmem [shape: f32[32,16], index: 0, kind: input, shape index: {}]   ;;  %s1099_s1 = inlined_call_operand.hbm [shape: f32[64,128], index: 1, kind: input, shape index: {}]   ;;  %s1100_s2 = inlined_call_operand.vmem [shape: f32[32,32], index: 2, kind: input, shape index: {}]   ;;  %s1101_s3 = inlined_call_operand.hbm [shape: f32[128,128], index: 3, kind: input, shape index: {}]   ;;  %s1102_s4 = inlined_call_operand.hbm [shape: f32[2,16,64], index: 4, kind: input, shape index: {}]   ;;  %s1103_s5 = inlined_call_operand.hbm [shape: f32[2,32,128], index: 5, kind: output, shape index: {}]  }
   0x1   :  { %11 = vsyncpa [#allocation6], 0 }
   0x2   :  { %12 = vsyncpa [#allocation4], 0 }
   0x3   :  { %14 = vsyncpa [#allocation4 + $0x1], 0  ;;  %s910_s18 = smov 0   ;;  %s912_s19 = smov 0  }
   0x4   :  { %s914_s20 = smov 0   ;;  %s916_s21 = smov 0  }
   0x5 LB: > { %s931_s22 = sadd.s32 4294967295, %s872_s21   ;;  %s589_s23 = sadd.s32 4294967294, %s872_s21   ;;  %s872_s21 = sphi %s916_s21, %s1117_s21   ;;  %s868_s20 = sphi %s914_s20, %s1116_s20   ;;  %s864_s19 = sphi %s912_s19, %s1115_s19   ;;  %s860_s18 = sphi %s910_s18, %s1114_s18  }
   0x6   : > { %p124_p0 = scmp.ne.s32.totalorder %s864_s19, %s860_s18  ;;  %p125_p1 = scmp.eq.s32.totalorder %s931_s22, 0 }
   0x7   : > { %p148_p2 = scmp.eq.s32.totalorder %s931_s22, 1  ;;  %p154_p3 = scmp.eq.s32.totalorder %s589_s23, 1 }
   0x8   : > { %p940_p4 = por %p125_p1, %p124_p0  ;;  %p590_p5 = scmp.ge.s32.totalorder %s872_s21, 1 }
   0x9   : > { %p945_p6 = por %p154_p3, %p124_p0  ;;  %p161_p7 = scmp.lt.s32.totalorder %s872_s21, 3 }
   0xa   : > { %s175_s28 = sshll.u32 %s1099_s1, 4  ;;  %s874_s30 = smov [#allocation2]   ;;  %s176_s28 = int_to_ptr.hbm [resolvable:$true] %s175_s28 }
   0xb   : > { %p953_p8 = pnand %p590_p5, %p161_p7  ;;  %s177_s6 = sshll.u32 %s874_s30, 4  ;;  %s178_s6 = int_to_ptr.vmem [resolvable:$true] %s177_s6 }
   0xc   : > { %s192_s9 = sshll.u32 %s1101_s3, 4  ;;  %s1104_s10 = smov 128   ;;  %s193_s9 = int_to_ptr.hbm [resolvable:$true] %s192_s9 }
   0xd   : > { %p649_p9 = pneg %p953_p8  ;;  %s1105_s11 = smov 8  }
   0xe   : > { %s877_s12 = smov [#allocation5]   ;;  %s972_s14 = sadd.s32 1, %s872_s21  }
   0xf   : > { %p650_p10 = pnand %p649_p9, %p125_p1  ;;  %s194_s13 = sshll.u32 %s877_s12, 4  ;;  %s195_s13 = int_to_ptr.vmem [resolvable:$true] %s194_s13 }
  0x10   : > { %s111_s15 = sadd.s32 1, %s868_s20  ;;  %s108_s16 = ssub.s32 %s872_s21, %s972_s14 }
  0x11   : > { %652 = dma.hbm_to_vmem [thread:$0]  (!%p650_p10), %s176_s28, 1024, %s178_s6, [#allocation3], %s1104_s10, %s1104_s10, %s1105_s11  }
  0x12   : > { %655 = dma.hbm_to_vmem [thread:$0]  (!%p650_p10), %s193_s9, 2048, %s195_s13, [#allocation6], %s1104_s10, %s1104_s10, %s1105_s11  }
  0x13   : > { %p118_p12 = scmp.ne.s32.totalorder %s868_s20, %s864_s19  ;;  %p109_p13 = scmp.eq.s32.totalorder %s108_s16, 0 }
  0x14   : > { %p119_p0 = scmp.eq.s32.totalorder %s872_s21, 0  ;;  %p666_p7 = scmp.lt.s32.totalorder %s872_s21, 2 }
  0x15   : > { %p982_p3 = por %p148_p2, %p118_p12  ;;  %s208_s26 = sand.u32 1, %s872_s21  }
  0x16   : > { %s987_s23 = scalar_select %p109_p13, %s868_s20, %s111_s15  }
  0x17   : > { %p120_p5 = por %p119_p0, %p118_p12  ;;  %s210_s27 = sand.u32 1, %s868_s20  }
  0x18   : > { %s594_s28 = sshll.u32 %s210_s27, 4  ;;  %s619_s30 = sshll.u32 %s872_s21, 4 }
  0x19   : > { %s217_s8 = scalar_lea.hbm %s1102_s4, %s619_s30  ;;  %s212_s12 = scalar_lea.vmem [#allocation7], %s594_s28 }
  0x1a   : > { %s218_s9 = sshll.u32 %s217_s8, 4  ;;  %s220_s13 = sshll.u32 %s212_s12, 4  ;;  %s219_s9 = int_to_ptr.hbm [resolvable:$true] %s218_s9  ;;  %s221_s13 = int_to_ptr.vmem [resolvable:$true] %s220_s13 }
  0x1b   : > { %p996_p2 = pnand %p666_p7, %p120_p5  ;;  %s209_s15 = scalar_lea.sflag [#allocation3], %s208_s26 }
  0x1c   : > { %s768_s10 = sshra.s32 %s219_s9, 4  ;;  %s775_s28 = scalar_lea.hbm %s1102_s4, 32  ;;  %s769_s10 = int_to_ptr.hbm [resolvable:$true] %s768_s10 }
  0x1d   : > { %s770_s11 = scalar_lea.hbm %s769_s10, 16  ;;  %p772_p10 = pneg %p996_p2 }
  0x1e   : > { %p771_p9 = scmp.ne.s32.totalorder %s769_s10, %s770_s11  ;;  %p776_p0 = scmp.lt.s32.totalorder %s769_s10, %s1102_s4 }
  0x1f   : > { %p777_p5 = scmp.lt.s32.totalorder %s775_s28, %s770_s11 }
  0x20   : > { %p773_p12 = pnand %p772_p10, %p771_p9 }
  0x21   : > { %p778_p7 = por %p777_p5, %p776_p0 }
  0x22   : > { %p774_p13 = pneg %p773_p12 }
  0x24   : > { %p779_p11 = pnand %p778_p7, %p774_p13 }
  0x26   : > { %782 = shalt.err (!%p779_p11)
}
  0x27   : > { %s1111_s26 = smov 8   ;;  %s1112_s8 = smov 128  }
  0x28   : > { %659 = dma.hbm_to_vmem [thread:$0]  (!%p996_p2), %s219_s9, 256, %s221_s13, %s209_s15, %s1112_s8, %s1112_s8, %s1111_s26  }
  0x29   : > { %232 = sbr.rel (%p953_p8) target bundleno = 635 (0x27b), region = 40 }
  0x2e   : > { %843 = dma.done.wait (%p125_p1), [#allocation3], 1024  }
  0x2f   : > { %845 = vsyncadd (%p125_p1), [#allocation3], 4294966272 }
  0x30   : > { %847 = dma.done.wait (%p125_p1), [#allocation6], 2048  }
  0x31   : > { %849 = vsyncadd (%p125_p1), [#allocation6], 4294965248  ;;  %s244_s10 = sand.u32 1, %s931_s22   ;;  %s1025_s11 = sand.u32 1, %s864_s19  }
  0x32   : > { %s600_s29 = sshll.u32 %s1025_s11, 4  ;;  %s245_s9 = scalar_lea.sflag [#allocation3], %s244_s10 }
  0x33   : > { %s248_s12 = scalar_lea.vmem [#allocation7], %s600_s29 }
  0x34   : > { %851 = dma.done.wait (%p940_p4), %s245_s9, 256  }
  0x35   : > { %853 = vsyncadd (%p940_p4), %s245_s9, 4294967040  ;;  %v277_v0 = vld [vmem:[%s248_s12 + $0x8] sm:$0xff]  ;;  %v276_v1 = vld [vmem:[%s248_s12] sm:$0xff]  ;;  %vm282_vm0 = vcmask 130048   ;;  %vm332_vm1 = vcmask 523264   ;;  %vm435_vm6 = vcmask 261120  }
  0x36   : > { %309 = vmatpush.msra.mxu0 %v277_v0  ;;  %v278_v2 = vld [vmem:[%s1098_s0] sm:$0xff]  ;;  %v331_v3 = vld [vmem:[#allocation2 + $0x38] sm:$0xff]  ;;  %v330_v4 = vld [vmem:[#allocation2 + $0x30] sm:$0xff]  ;;  %s601_s16 = sshll.u32 %s1025_s11, 5  ;;  %s620_s15 = sshll.u32 %s931_s22, 5 }
  0x37   : > { %353 = vmatpush.msra.mxu1 %v331_v3  ;;  %v329_v5 = vld [vmem:[#allocation2 + $0x28] sm:$0xff]  ;;  %v328_v6 = vld [vmem:[#allocation2 + $0x20] sm:$0xff]  ;;  %v327_v7 = vld [vmem:[#allocation2 + $0x18] sm:$0xff]  ;;  %s275_s24 = scalar_lea.vmem [#allocation8], %s601_s16  ;;  %s493_s28 = scalar_lea.hbm %s1103_s5, %s620_s15 }
  0x38   : > { %310 = vmatpush.msra.mxu0 %v276_v1  ;;  %v279_v8 = vld [vmem:[%s1098_s0 + $0x8] sm:$0xff]  ;;  %v326_v9 = vld [vmem:[#allocation2 + $0x10] sm:$0xff]  ;;  %v281_v12 = vld [vmem:[%s1098_s0 + $0x18] sm:$0xff]  ;;  %s494_s6 = sshll.u32 %s275_s24, 4  ;;  %s496_s7 = sshll.u32 %s493_s28, 4  ;;  %s495_s6 = int_to_ptr.vmem [resolvable:$true] %s494_s6  ;;  %s497_s7 = int_to_ptr.hbm [resolvable:$true] %s496_s7 }
  0x39   : > { %602 = vmatmul.msk.f32.vlgmr.msra.gmra.mxu0 %vm282_vm0, %v278_v2  ;;  %354 = vmatpush.msra.mxu1 %v330_v4  ;;  %v325_v10 = vld [vmem:[#allocation2 + $0x8] sm:$0xff]  ;;  %v280_v11 = vld [vmem:[%s1098_s0 + $0x10] sm:$0xff]  ;;  %v324_v13 = vld [vmem:[#allocation2] sm:$0xff]  ;;  %s482_s26 = scalar_lea.sflag [#allocation4], %s1025_s11  ;;  %s812_s8 = sshra.s32 %s497_s7, 4  ;;  %s813_s8 = int_to_ptr.hbm [resolvable:$true] %s812_s8 }
  0x3a   : > { %v401_v14 = vld [vmem:[#allocation5 + $0x78] sm:$0xff]  ;;  %v400_v15 = vld [vmem:[#allocation5 + $0x70] sm:$0xff]  ;;  %v399_v16 = vld [vmem:[#allocation5 + $0x68] sm:$0xff]  ;;  %s814_s10 = scalar_lea.hbm %s813_s8, 32  ;;  %s818_s9 = scalar_lea.hbm %s1103_s5, 64 }
  0x3b   : > { %355 = vmatpush.msra.mxu1 %v329_v5  ;;  %402 = vmatpush.msrb.mxu0 %v401_v14  ;;  %v398_v17 = vld [vmem:[#allocation5 + $0x60] sm:$0xff]  ;;  %v397_v18 = vld [vmem:[#allocation5 + $0x58] sm:$0xff]  ;;  %v396_v20 = vld [vmem:[#allocation5 + $0x50] sm:$0xff]  ;;  %p815_p1 = scmp.ne.s32.totalorder %s813_s8, %s814_s10  ;;  %p819_p11 = scmp.lt.s32.totalorder %s813_s8, %s1103_s5 }
  0x3c   : > { %621 = vmatpush.msra.mxu2 %v401_v14  ;;  %v395_v21 = vld [vmem:[#allocation5 + $0x48] sm:$0xff]  ;;  %v394_v22 = vld [vmem:[#allocation5 + $0x40] sm:$0xff]  ;;  %v393_v23 = vld [vmem:[#allocation5 + $0x38] sm:$0xff]  ;;  %p820_p2 = scmp.lt.s32.totalorder %s818_s9, %s814_s10 }
  0x3d   : > { %356 = vmatpush.msra.mxu1 %v328_v6  ;;  %403 = vmatpush.msrb.mxu0 %v400_v15  ;;  %v392_v25 = vld [vmem:[#allocation5 + $0x30] sm:$0xff]  ;;  %v391_v26 = vld [vmem:[#allocation5 + $0x28] sm:$0xff]  ;;  %v390_v27 = vld [vmem:[#allocation5 + $0x20] sm:$0xff]  ;;  %p816_p4 = pnand %p815_p1, %p982_p3 }
  0x3e   : > { %622 = vmatpush.msra.mxu2 %v400_v15  ;;  %v389_v28 = vld [vmem:[#allocation5 + $0x18] sm:$0xff]  ;;  %v388_v30 = vld [vmem:[#allocation5 + $0x10] sm:$0xff]  ;;  %v387_v32 = vld [vmem:[#allocation5 + $0x8] sm:$0xff]  ;;  %p821_p9 = por %p820_p2, %p819_p11 }
  0x3f   : > { %357 = vmatpush.msra.mxu1 %v327_v7  ;;  %404 = vmatpush.msrb.mxu0 %v399_v16  ;;  %v386_v33 = vld [vmem:[#allocation5] sm:$0xff]  ;;  %v432_v51 = vld [vmem:[%s1100_s2 + $0x8] sm:$0xff]  ;;  %v433_v52 = vld [vmem:[%s1100_s2 + $0x10] sm:$0xff]  ;;  %p817_p8 = pneg %p816_p4 }
  0x40   : > { %623 = vmatpush.msra.mxu2 %v399_v16  ;;  %v431_v50 = vld [vmem:[%s1100_s2] sm:$0xff]  ;;  %v434_v53 = vld [vmem:[%s1100_s2 + $0x18] sm:$0xff] }
  0x41   : > { %603 = vmatmul.msk.f32.gmra.mxu0 %vm282_vm0, %v279_v8  ;;  %358 = vmatpush.msra.mxu1 %v326_v9  ;;  %p822_p10 = pnand %p821_p9, %p817_p8 }
  0x42   : > { %405 = vmatpush.msrb.mxu0 %v398_v17  ;;  %624 = vmatpush.msra.mxu2 %v398_v17 }
  0x43   : > { %359 = vmatpush.msra.mxu1 %v325_v10 }
  0x44   : > { %406 = vmatpush.msrb.mxu0 %v397_v18  ;;  %625 = vmatpush.msra.mxu2 %v397_v18 }
  0x45   : > { %360 = vmatpush.msra.mxu1 %v324_v13 }
  0x46   : > { %407 = vmatpush.msrb.mxu0 %v396_v20  ;;  %626 = vmatpush.msra.mxu2 %v396_v20 }
  0x48   : > { %408 = vmatpush.msrb.mxu0 %v395_v21  ;;  %627 = vmatpush.msra.mxu2 %v395_v21 }
  0x49   : > { %604 = vmatmul.msk.f32.gmra.mxu0 %vm282_vm0, %v280_v11 }
  0x4a   : > { %409 = vmatpush.msrb.mxu0 %v394_v22  ;;  %628 = vmatpush.msra.mxu2 %v394_v22 }
  0x4c   : > { %410 = vmatpush.msrb.mxu0 %v393_v23  ;;  %629 = vmatpush.msra.mxu2 %v393_v23 }
  0x4e   : > { %411 = vmatpush.msrb.mxu0 %v392_v25  ;;  %630 = vmatpush.msra.mxu2 %v392_v25 }
  0x50   : > { %412 = vmatpush.msrb.mxu0 %v391_v26  ;;  %631 = vmatpush.msra.mxu2 %v391_v26 }
  0x51   : > { %605 = vmatmul.msk.f32.gmra.mxu0 %vm282_vm0, %v281_v12 }
  0x52   : > { %413 = vmatpush.msrb.mxu0 %v390_v27  ;;  %632 = vmatpush.msra.mxu2 %v390_v27 }
  0x54   : > { %414 = vmatpush.msrb.mxu0 %v389_v28  ;;  %633 = vmatpush.msra.mxu2 %v389_v28 }
  0x56   : > { %415 = vmatpush.msrb.mxu0 %v388_v30  ;;  %634 = vmatpush.msra.mxu2 %v388_v30 }
  0x58   : > { %416 = vmatpush.msrb.mxu0 %v387_v32  ;;  %635 = vmatpush.msra.mxu2 %v387_v32 }
  0x5a   : > { %417 = vmatpush.msrb.mxu0 %v386_v33  ;;  %636 = vmatpush.msra.mxu2 %v386_v33 }
  0xb6   : > { %v312_v19 = vpop.f32.mrf.mxu0 }
  0xb7   : > { %606 = vmatmul.msk.f32.vlgmr.msra.gmra.mxu1 %vm332_vm1, %v312_v19 }
  0xbe   : > { %v315_v24 = vpop.f32.mrf.mxu0 }
  0xbf   : > { %607 = vmatmul.msk.f32.gmra.mxu1 %vm332_vm1, %v315_v24 }
  0xc6   : > { %v318_v29 = vpop.f32.mrf.mxu0 }
  0xc7   : > { %608 = vmatmul.msk.f32.gmra.mxu1 %vm332_vm1, %v318_v29 }
  0xce   : > { %v321_v31 = vpop.f32.mrf.mxu0 }
  0xcf   : > { %609 = vmatmul.msk.f32.gmra.mxu1 %vm332_vm1, %v321_v31 }
 0x134   : > { %v362_v34 = vpop.f32.mrf.mxu1 }
 0x135   : > { %vm374_vm2 = vcmp.ge.f32.partialorder %v362_v34, 0.0  ;;  %v378_v35 = vmul.f32 0.01, %v362_v34 }
 0x137   : > { %v382_v36 = vsel %vm374_vm2, %v362_v34, %v378_v35 }
 0x138   : > { %418 = vmatmul.f32.vlgmr.msrb.gmra.mxu0 %v382_v36 }
 0x13c   : > { %v365_v37 = vpop.f32.mrf.mxu1 }
 0x13d   : > { %v379_v38 = vmul.f32 0.01, %v365_v37  ;;  %vm375_vm3 = vcmp.ge.f32.partialorder %v365_v37, 0.0 }
 0x13f   : > { %v383_v39 = vsel %vm375_vm3, %v365_v37, %v379_v38 }
 0x140   : > { %421 = vmatmul.f32.gmra.mxu0 %v383_v39 }
 0x144   : > { %v368_v40 = vpop.f32.mrf.mxu1 }
 0x145   : > { %v380_v41 = vmul.f32 0.01, %v368_v40  ;;  %vm376_vm4 = vcmp.ge.f32.partialorder %v368_v40, 0.0 }
 0x147   : > { %v384_v42 = vsel %vm376_vm4, %v368_v40, %v380_v41 }
 0x148   : > { %424 = vmatmul.f32.vlgmr.msra.gmra.mxu2 %v384_v42 }
 0x14c   : > { %v371_v43 = vpop.f32.mrf.mxu1 }
 0x14d   : > { %vm377_vm5 = vcmp.ge.f32.partialorder %v371_v43, 0.0  ;;  %v381_v44 = vmul.f32 0.01, %v371_v43 }
 0x14f   : > { %v385_v45 = vsel %vm377_vm5, %v371_v43, %v381_v44 }
 0x150   : > { %427 = vmatmul.f32.gmra.mxu2 %v385_v45 }
 0x1b5   : > { %v419_v47 = vpop.f32.mrf.mxu0 }
 0x1bd   : > { %v422_v49 = vpop.f32.mrf.mxu0 }
 0x1cb   : > { %v425_v46 = vpop.f32.mrf.mxu2 }
 0x1d3   : > { %v428_v48 = vpop.f32.mrf.mxu2 }
 0x1d4   : > { %460 = vmatpush.msra.mxu3 %v428_v48 }
 0x1d6   : > { %461 = vmatpush.msra.mxu3 %v425_v46 }
 0x1d8   : > { %462 = vmatpush.msra.mxu3 %v422_v49 }
 0x1da   : > { %463 = vmatpush.msra.mxu3 %v419_v47 }
 0x1db   : > { %610 = vmatmul.msk.f32.vlgmr.msra.gmra.mxu3 %vm435_vm6, %v431_v50 }
 0x1e3   : > { %611 = vmatmul.msk.f32.gmra.mxu3 %vm435_vm6, %v432_v51 }
 0x1eb   : > { %612 = vmatmul.msk.f32.gmra.mxu3 %vm435_vm6, %v433_v52 }
 0x1f3   : > { %613 = vmatmul.msk.f32.gmra.mxu3 %vm435_vm6, %v434_v53 }
 0x25e   : > { %v465_v54 = vpop.f32.mrf.mxu3 }
 0x25f   : > { %477 = vst [vmem:[%s275_s24] sm:$0xff] %v465_v54 }
 0x266   : > { %v468_v55 = vpop.f32.mrf.mxu3 }
 0x267   : > { %478 = vst [vmem:[%s275_s24 + $0x8] sm:$0xff] %v468_v55 }
 0x26e   : > { %v471_v56 = vpop.f32.mrf.mxu3 }
 0x26f   : > { %479 = vst [vmem:[%s275_s24 + $0x10] sm:$0xff] %v471_v56 }
 0x276   : > { %v474_v57 = vpop.f32.mrf.mxu3 }
 0x277   : > { %480 = vst [vmem:[%s275_s24 + $0x18] sm:$0xff] %v474_v57 }
 0x278   : > { %825 = shalt.err (!%p822_p10)
}
 0x279   : > { %s878_s11 = smov 128   ;;  %s879_s16 = smov 8  }
 0x27a   : > { %647 = dma.vmem_to_hbm [thread:$0]  (%p982_p3), %s495_s6, 512, %s497_s7, %s482_s26, %s878_s11, %s878_s11, %s879_s16  }
 0x27b PF: > { %s511_s24 = sand.u32 1, %s860_s18   ;;  %p1113_p12 = scmp.ge.s32.totalorder %s872_s21, 2 }
 0x27c   : > { %s512_s15 = scalar_lea.sflag [#allocation4], %s511_s24 }
 0x27d   : > { %p661_p13 = pnand %p1113_p12, %p945_p6 }
 0x27f   : > { %p662_p0 = pneg %p661_p13 }
 0x281   : > { %855 = dma.done.wait (%p662_p0), %s512_s15, 512  }
 0x282   : > { %857 = vsyncadd (%p662_p0), %s512_s15, 4294966784  ;;  %p17_p5 = scmp.ge.s32.totalorder %s972_s14, 4   ;;  %s1114_s18 = smov %s864_s19 }
 0x283   : > { %s1115_s19 = smov %s868_s20  ;;  %s1116_s20 = smov %s987_s23 }
 0x284   : > { %s1117_s21 = smov %s972_s14  ;;  %19 = sbr.rel (!%p17_p5) target bundleno = 5 (0x5), region = 92 }
 0x289   :  { %518 = vsyncpa [#allocation3], 1 }
 0x28a   :  { %520 = vsyncpa [#allocation3 + $0x1], 1 }
 0x28b   :  { %521 = vsyncpa [#allocation6], 1 }
 0x28c   :  { %522 = vsyncpa [#allocation4], 1 }
 0x28d   :  { %524 = vsyncpa [#allocation4 + $0x1], 1 }

</bundles_post_ra>
